<compile_context>
chip_gen: v7x
topology: tpu7x:2x2x1
jax: 0.10.0
libtpu: 0.0.40
codegen_flags: <defaults>
</compile_context>

<pallas_src>
import jax
import jax.numpy as jnp
from jax.experimental import pallas as pl
from jax.experimental.pallas import tpu as pltpu


_NEG_BIG = -1e30  # finite "-inf" so fully-masked softmax rows never produce NaN


# --------------------------------- Pallas kernel ---------------------------------

def _gat3_encoder_kernel(x_ref, adj_ref,
                         w1_ref, al1_ref, ar1_ref, b1_ref,
                         w2_ref, al2_ref, ar2_ref, b2_ref,
                         w3_ref, al3_ref, ar3_ref, b3_ref,
                         o_ref):
    """Three stacked single-head GATConv layers for one graph of the batch.

    Block shapes:
      x_ref   : (1, N, F_in)  node features
      adj_ref : (1, N, N)     adj[dst, src] = 1.0 iff edge src->dst
      w*_ref  : (F, H)        GATConv fc weight (no fc bias, matches DGL)
      al*_ref : (1, H)        attn_l (source attention vector)
      ar*_ref : (1, H)        attn_r (destination attention vector)
      b*_ref  : (1, H)        GATConv output bias
      o_ref   : (1, N, H)
    """
    x = x_ref[0]      # (N, F_in)
    adj = adj_ref[0]  # (N, N)

    def gat_layer(h_in, w, al, ar, b):
        # Linear projection on the MXU.
        h = jnp.dot(h_in, w, preferred_element_type=jnp.float32)       # (N, H)
        # Per-node attention scores: er on destinations, el on sources.
        er = jnp.sum(h * ar, axis=-1, keepdims=True)                    # (N, 1)
        el = jnp.dot(al, h.T, preferred_element_type=jnp.float32)       # (1, N)
        e = er + el                                                     # (N_dst, N_src)
        e = jnp.where(e >= 0.0, e, 0.2 * e)                             # LeakyReLU(0.2)
        e = jnp.where(adj > 0.0, e, _NEG_BIG)                           # mask non-edges
        # Edge softmax over incoming edges; zero-in-degree rows aggregate to 0
        # (matches allow_zero_in_degree=True with sum aggregation).
        m = jnp.max(e, axis=-1, keepdims=True)
        p = jnp.exp(e - m) * adj
        denom = jnp.sum(p, axis=-1, keepdims=True)
        alpha = p * jnp.where(denom > 0.0, 1.0 / denom, 0.0)            # (N, N)
        # Weighted aggregation + bias (activation=None in the module).
        return jnp.dot(alpha, h, preferred_element_type=jnp.float32) + b

    h = gat_layer(x, w1_ref[...], al1_ref[...], ar1_ref[...], b1_ref[...])
    h = gat_layer(h, w2_ref[...], al2_ref[...], ar2_ref[...], b2_ref[...])
    h = gat_layer(h, w3_ref[...], al3_ref[...], ar3_ref[...], b3_ref[...])
    o_ref[0] = h.astype(o_ref.dtype)


# ----------------------------------- wrappers ------------------------------------

_PARAM_ORDER = ("w", "al", "ar", "b")


def _flat_params(params):
    out = []
    for i in (1, 2, 3):
        for name in _PARAM_ORDER:
            out.append(params[f"{name}{i}"])
    return out


def gat3_encoder_forward(x, adj, params):
    """x: (B, N, F_in) f32; adj: (B, N, N) f32 mask. Returns (B, N, H) f32."""
    B, N, _ = x.shape
    H = params["w1"].shape[1]
    weights = _flat_params(params)

    def batch_block(shape):
        rest = (0,) * (len(shape) - 1)
        return pl.BlockSpec((1,) + tuple(shape[1:]), lambda b, rest=rest: (b,) + rest)

    def full_block(arr):
        zeros = (0,) * arr.ndim
        return pl.BlockSpec(arr.shape, lambda b, zeros=zeros: zeros)

    in_specs = [batch_block(x.shape), batch_block(adj.shape)]
    in_specs += [full_block(w) for w in weights]

    return pl.pallas_call(
        _gat3_encoder_kernel,
        out_shape=jax.ShapeDtypeStruct((B, N, H), jnp.float32),
        grid_spec=pltpu.PrefetchScalarGridSpec(
            num_scalar_prefetch=0,
            grid=(B,),
            in_specs=in_specs,
            out_specs=pl.BlockSpec((1, N, H), lambda b: (b, 0, 0)),
        ),
        compiler_params=pltpu.CompilerParams(
            dimension_semantics=("parallel",)),
    )(x, adj, *weights)


def graph_encoder_net_forward(graphs_tuple, vnr_params, static_params):
    """Mirrors GraphEncoderNet.forward: returns (vnr_hidden, static_hidden),
    each of shape (batch, hidden, num_nodes)."""
    (vnr_x, vnr_adj), (static_x, static_adj) = graphs_tuple
    vnr_nodes = gat3_encoder_forward(vnr_x, vnr_adj, vnr_params)            # (B, Nv, H)
    static_nodes = gat3_encoder_forward(static_x, static_adj, static_params)  # (B, Ns, H)
    # .reshape(batch, -1, hidden).transpose(1, 2)  ->  (B, H, N)   (layout plumbing)
    return jnp.swapaxes(vnr_nodes, 1, 2), jnp.swapaxes(static_nodes, 1, 2)


# --------------------------- plain-JAX reference (check) ---------------------------

def _gat3_encoder_ref(x, adj, p):
    def layer(h_in, w, al, ar, b):
        h = jnp.einsum("bnf,fh->bnh", h_in, w)
        er = jnp.einsum("bnh,h->bn", h, ar[0])[..., None]      # (B, N, 1) dst
        el = jnp.einsum("bnh,h->bn", h, al[0])[:, None, :]     # (B, 1, N) src
        e = er + el
        e = jnp.where(e >= 0.0, e, 0.2 * e)
        e = jnp.where(adj > 0.0, e, _NEG_BIG)
        m = jnp.max(e, axis=-1, keepdims=True)
        pm = jnp.exp(e - m) * adj
        denom = jnp.sum(pm, axis=-1, keepdims=True)
        alpha = pm * jnp.where(denom > 0.0, 1.0 / denom, 0.0)
        return jnp.einsum("bds,bsh->bdh", alpha, h) + b
    h = layer(x, p["w1"], p["al1"], p["ar1"], p["b1"])
    h = layer(h, p["w2"], p["al2"], p["ar2"], p["b2"])
    h = layer(h, p["w3"], p["al3"], p["ar3"], p["b3"])
    return h


# ----------------------------------- test setup ------------------------------------

def _init_gat3_params(key, in_size, hidden):
    sizes = [(in_size, hidden), (hidden, hidden), (hidden, hidden)]
    ks = jax.random.split(key, 4 * len(sizes))
    params = {}
    for i, (fi, fo) in enumerate(sizes, start=1):
        kw, kl, kr, kb = ks[4 * (i - 1): 4 * i]
        params[f"w{i}"] = jax.random.normal(kw, (fi, fo), jnp.float32) * (fi ** -0.5)
        params[f"al{i}"] = jax.random.normal(kl, (1, fo), jnp.float32) * 0.1
        params[f"ar{i}"] = jax.random.normal(kr, (1, fo), jnp.float32) * 0.1
        params[f"b{i}"] = jax.random.normal(kb, (1, fo), jnp.float32) * 0.1
    return params


def _make_random_adj(key, batch, n, p):
    a = (jax.random.uniform(key, (batch, n, n)) < p).astype(jnp.float32)
    eye = jnp.eye(n, dtype=jnp.float32)[None, :, :]
    return jnp.maximum(a, eye)   # include self-loops so every node has in-degree >= 1


if __name__ == "__main__":
    B = 2
    HIDDEN = 32
    N_STATIC, STATIC_SIZE = 16, 4
    N_VNR, VNR_SIZE = 8, 6

    key = jax.random.PRNGKey(0)
    k = jax.random.split(key, 6)

    static_x = jax.random.normal(k[0], (B, N_STATIC, STATIC_SIZE), jnp.float32)
    vnr_x = jax.random.normal(k[1], (B, N_VNR, VNR_SIZE), jnp.float32)
    static_adj = _make_random_adj(k[2], B, N_STATIC, p=0.3)
    vnr_adj = _make_random_adj(k[3], B, N_VNR, p=0.4)
    static_params = _init_gat3_params(k[4], STATIC_SIZE, HIDDEN)
    vnr_params = _init_gat3_params(k[5], VNR_SIZE, HIDDEN)

    graphs_tuple = ((vnr_x, vnr_adj), (static_x, static_adj))
    vnr_hidden, static_hidden = graph_encoder_net_forward(
        graphs_tuple, vnr_params, static_params)
    jax.block_until_ready((vnr_hidden, static_hidden))

    assert vnr_hidden.shape == (B, HIDDEN, N_VNR)
    assert static_hidden.shape == (B, HIDDEN, N_STATIC)

    # Reference check (same math in plain JAX).
    vnr_ref = jnp.swapaxes(_gat3_encoder_ref(vnr_x, vnr_adj, vnr_params), 1, 2)
    static_ref = jnp.swapaxes(_gat3_encoder_ref(static_x, static_adj, static_params), 1, 2)
    assert jnp.allclose(vnr_hidden, vnr_ref, atol=1e-2, rtol=1e-2)
    assert jnp.allclose(static_hidden, static_ref, atol=1e-2, rtol=1e-2)
    assert bool(jnp.all(jnp.isfinite(vnr_hidden))) and bool(jnp.all(jnp.isfinite(static_hidden)))

    print("KERNEL_OK")
</pallas_src>

<mosaic_0001>
module attributes {stable_mosaic.version = 11 : i64} {
  func.func @_gat3_encoder_kernel(%arg0: i32, %arg1: memref<1x8x6xf32, #tpu.memory_space<vmem>>, %arg2: memref<1x8x8xf32, #tpu.memory_space<vmem>>, %arg3: memref<6x32xf32, #tpu.memory_space<vmem>>, %arg4: memref<1x32xf32, #tpu.memory_space<vmem>>, %arg5: memref<1x32xf32, #tpu.memory_space<vmem>>, %arg6: memref<1x32xf32, #tpu.memory_space<vmem>>, %arg7: memref<32x32xf32, #tpu.memory_space<vmem>>, %arg8: memref<1x32xf32, #tpu.memory_space<vmem>>, %arg9: memref<1x32xf32, #tpu.memory_space<vmem>>, %arg10: memref<1x32xf32, #tpu.memory_space<vmem>>, %arg11: memref<32x32xf32, #tpu.memory_space<vmem>>, %arg12: memref<1x32xf32, #tpu.memory_space<vmem>>, %arg13: memref<1x32xf32, #tpu.memory_space<vmem>>, %arg14: memref<1x32xf32, #tpu.memory_space<vmem>>, %arg15: memref<1x8x32xf32, #tpu.memory_space<vmem>>) attributes {dimension_semantics = [#tpu.dimension_semantics<parallel>], iteration_bounds = array<i64: 2>, scalar_prefetch = 0 : i64, scratch_operands = 0 : i64, tpu.core_type = #tpu.core_type<tc>, window_params = [{transform_indices = @transform_0, window_bounds = array<i64: 1, 8, 6>}, {transform_indices = @transform_1, window_bounds = array<i64: 1, 8, 8>}, {pipeline_mode = #tpu.pipeline_mode<synchronous>, transform_indices = @transform_2, window_bounds = array<i64: 6, 32>}, {pipeline_mode = #tpu.pipeline_mode<synchronous>, transform_indices = @transform_3, window_bounds = array<i64: 1, 32>}, {pipeline_mode = #tpu.pipeline_mode<synchronous>, transform_indices = @transform_4, window_bounds = array<i64: 1, 32>}, {pipeline_mode = #tpu.pipeline_mode<synchronous>, transform_indices = @transform_5, window_bounds = array<i64: 1, 32>}, {pipeline_mode = #tpu.pipeline_mode<synchronous>, transform_indices = @transform_6, window_bounds = array<i64: 32, 32>}, {pipeline_mode = #tpu.pipeline_mode<synchronous>, transform_indices = @transform_7, window_bounds = array<i64: 1, 32>}, {pipeline_mode = #tpu.pipeline_mode<synchronous>, transform_indices = @transform_8, window_bounds = array<i64: 1, 32>}, {pipeline_mode = #tpu.pipeline_mode<synchronous>, transform_indices = @transform_9, window_bounds = array<i64: 1, 32>}, {pipeline_mode = #tpu.pipeline_mode<synchronous>, transform_indices = @transform_10, window_bounds = array<i64: 32, 32>}, {pipeline_mode = #tpu.pipeline_mode<synchronous>, transform_indices = @transform_11, window_bounds = array<i64: 1, 32>}, {pipeline_mode = #tpu.pipeline_mode<synchronous>, transform_indices = @transform_12, window_bounds = array<i64: 1, 32>}, {pipeline_mode = #tpu.pipeline_mode<synchronous>, transform_indices = @transform_13, window_bounds = array<i64: 1, 32>}, {transform_indices = @transform_14, window_bounds = array<i64: 1, 8, 32>}]} {
    %c0 = arith.constant 0 : index
    %c0_0 = arith.constant 0 : index
    %c0_1 = arith.constant 0 : index
    %0 = vector.load %arg1[%c0, %c0_0, %c0_1] : memref<1x8x6xf32, #tpu.memory_space<vmem>>, vector<1x8x6xf32>
    %1 = vector.shape_cast %0 : vector<1x8x6xf32> to vector<8x6xf32>
    %c0_2 = arith.constant 0 : index
    %c0_3 = arith.constant 0 : index
    %c0_4 = arith.constant 0 : index
    %2 = vector.load %arg2[%c0_2, %c0_3, %c0_4] : memref<1x8x8xf32, #tpu.memory_space<vmem>>, vector<1x8x8xf32>
    %3 = vector.shape_cast %2 : vector<1x8x8xf32> to vector<8x8xf32>
    %c0_5 = arith.constant 0 : index
    %c0_6 = arith.constant 0 : index
    %4 = vector.load %arg3[%c0_5, %c0_6] : memref<6x32xf32, #tpu.memory_space<vmem>>, vector<6x32xf32>
    %c0_7 = arith.constant 0 : index
    %c0_8 = arith.constant 0 : index
    %5 = vector.load %arg4[%c0_7, %c0_8] : memref<1x32xf32, #tpu.memory_space<vmem>>, vector<1x32xf32>
    %c0_9 = arith.constant 0 : index
    %c0_10 = arith.constant 0 : index
    %6 = vector.load %arg5[%c0_9, %c0_10] : memref<1x32xf32, #tpu.memory_space<vmem>>, vector<1x32xf32>
    %c0_11 = arith.constant 0 : index
    %c0_12 = arith.constant 0 : index
    %7 = vector.load %arg6[%c0_11, %c0_12] : memref<1x32xf32, #tpu.memory_space<vmem>>, vector<1x32xf32>
    %cst = arith.constant dense<0.000000e+00> : vector<8x32xf32>
    %8 = tpu.matmul %1, %4, %cst {dimension_numbers = #tpu.dot_dimension_numbers<[1], [0], [0], [1], [0, 0, 1, 1], [], []>} : vector<8x6xf32>, vector<6x32xf32>, vector<8x32xf32> -> vector<8x32xf32>
    %9 = vector.broadcast %6 : vector<1x32xf32> to vector<8x32xf32>
    %10 = arith.mulf %8, %9 : vector<8x32xf32>
    %cst_13 = arith.constant dense<0.000000e+00> : vector<8xf32>
    %11 = vector.multi_reduction <add>, %10, %cst_13 [1] : vector<8x32xf32> to vector<8xf32>
    %12 = vector.shape_cast %11 : vector<8xf32> to vector<8x1xf32>
    %13 = tpu.transpose %8, [1, 0] : vector<8x32xf32> -> vector<32x8xf32>
    %cst_14 = arith.constant dense<0.000000e+00> : vector<1x8xf32>
    %14 = tpu.matmul %5, %13, %cst_14 {dimension_numbers = #tpu.dot_dimension_numbers<[1], [0], [0], [1], [0, 0, 1, 1], [], []>} : vector<1x32xf32>, vector<32x8xf32>, vector<1x8xf32> -> vector<1x8xf32>
    %15 = vector.broadcast %12 : vector<8x1xf32> to vector<8x8xf32>
    %16 = vector.broadcast %14 : vector<1x8xf32> to vector<8x8xf32>
    %17 = arith.addf %15, %16 : vector<8x8xf32>
    %cst_15 = arith.constant 0.000000e+00 : f32
    %18 = vector.broadcast %cst_15 : f32 to vector<8x8xf32>
    %19 = arith.cmpf oge, %17, %18 : vector<8x8xf32>
    %cst_16 = arith.constant 2.000000e-01 : f32
    %20 = vector.broadcast %cst_16 : f32 to vector<8x8xf32>
    %21 = arith.mulf %20, %17 : vector<8x8xf32>
    %22 = arith.select %19, %17, %21 : vector<8x8xi1>, vector<8x8xf32>
    %cst_17 = arith.constant 0.000000e+00 : f32
    %23 = vector.broadcast %cst_17 : f32 to vector<8x8xf32>
    %24 = arith.cmpf ogt, %3, %23 : vector<8x8xf32>
    %cst_18 = arith.constant -1.000000e+30 : f32
    %25 = vector.broadcast %cst_18 : f32 to vector<8x8xf32>
    %26 = arith.select %24, %22, %25 : vector<8x8xi1>, vector<8x8xf32>
    %cst_19 = arith.constant dense<0xFF800000> : vector<8xf32>
    %27 = vector.multi_reduction <maximumf>, %26, %cst_19 [1] : vector<8x8xf32> to vector<8xf32>
    %28 = vector.shape_cast %27 : vector<8xf32> to vector<8x1xf32>
    %29 = vector.broadcast %28 : vector<8x1xf32> to vector<8x8xf32>
    %30 = arith.subf %26, %29 : vector<8x8xf32>
    %31 = math.exp %30 : vector<8x8xf32>
    %32 = arith.mulf %31, %3 : vector<8x8xf32>
    %cst_20 = arith.constant dense<0.000000e+00> : vector<8xf32>
    %33 = vector.multi_reduction <add>, %32, %cst_20 [1] : vector<8x8xf32> to vector<8xf32>
    %34 = vector.shape_cast %33 : vector<8xf32> to vector<8x1xf32>
    %cst_21 = arith.constant 0.000000e+00 : f32
    %35 = vector.broadcast %cst_21 : f32 to vector<8x1xf32>
    %36 = arith.cmpf ogt, %34, %35 : vector<8x1xf32>
    %cst_22 = arith.constant 1.000000e+00 : f32
    %37 = vector.broadcast %cst_22 : f32 to vector<8x1xf32>
    %38 = arith.divf %37, %34 : vector<8x1xf32>
    %cst_23 = arith.constant 0.000000e+00 : f32
    %39 = vector.broadcast %cst_23 : f32 to vector<8x1xf32>
    %40 = arith.select %36, %38, %39 : vector<8x1xi1>, vector<8x1xf32>
    %41 = vector.broadcast %40 : vector<8x1xf32> to vector<8x8xf32>
    %42 = arith.mulf %32, %41 : vector<8x8xf32>
    %cst_24 = arith.constant dense<0.000000e+00> : vector<8x32xf32>
    %43 = tpu.matmul %42, %8, %cst_24 {dimension_numbers = #tpu.dot_dimension_numbers<[1], [0], [0], [1], [0, 0, 1, 1], [], []>} : vector<8x8xf32>, vector<8x32xf32>, vector<8x32xf32> -> vector<8x32xf32>
    %44 = vector.broadcast %7 : vector<1x32xf32> to vector<8x32xf32>
    %45 = arith.addf %43, %44 : vector<8x32xf32>
    %c0_25 = arith.constant 0 : index
    %c0_26 = arith.constant 0 : index
    %46 = vector.load %arg7[%c0_25, %c0_26] : memref<32x32xf32, #tpu.memory_space<vmem>>, vector<32x32xf32>
    %c0_27 = arith.constant 0 : index
    %c0_28 = arith.constant 0 : index
    %47 = vector.load %arg8[%c0_27, %c0_28] : memref<1x32xf32, #tpu.memory_space<vmem>>, vector<1x32xf32>
    %c0_29 = arith.constant 0 : index
    %c0_30 = arith.constant 0 : index
    %48 = vector.load %arg9[%c0_29, %c0_30] : memref<1x32xf32, #tpu.memory_space<vmem>>, vector<1x32xf32>
    %c0_31 = arith.constant 0 : index
    %c0_32 = arith.constant 0 : index
    %49 = vector.load %arg10[%c0_31, %c0_32] : memref<1x32xf32, #tpu.memory_space<vmem>>, vector<1x32xf32>
    %cst_33 = arith.constant dense<0.000000e+00> : vector<8x32xf32>
    %50 = tpu.matmul %45, %46, %cst_33 {dimension_numbers = #tpu.dot_dimension_numbers<[1], [0], [0], [1], [0, 0, 1, 1], [], []>} : vector<8x32xf32>, vector<32x32xf32>, vector<8x32xf32> -> vector<8x32xf32>
    %51 = vector.broadcast %48 : vector<1x32xf32> to vector<8x32xf32>
    %52 = arith.mulf %50, %51 : vector<8x32xf32>
    %cst_34 = arith.constant dense<0.000000e+00> : vector<8xf32>
    %53 = vector.multi_reduction <add>, %52, %cst_34 [1] : vector<8x32xf32> to vector<8xf32>
    %54 = vector.shape_cast %53 : vector<8xf32> to vector<8x1xf32>
    %55 = tpu.transpose %50, [1, 0] : vector<8x32xf32> -> vector<32x8xf32>
    %cst_35 = arith.constant dense<0.000000e+00> : vector<1x8xf32>
    %56 = tpu.matmul %47, %55, %cst_35 {dimension_numbers = #tpu.dot_dimension_numbers<[1], [0], [0], [1], [0, 0, 1, 1], [], []>} : vector<1x32xf32>, vector<32x8xf32>, vector<1x8xf32> -> vector<1x8xf32>
    %57 = vector.broadcast %54 : vector<8x1xf32> to vector<8x8xf32>
    %58 = vector.broadcast %56 : vector<1x8xf32> to vector<8x8xf32>
    %59 = arith.addf %57, %58 : vector<8x8xf32>
    %cst_36 = arith.constant 0.000000e+00 : f32
    %60 = vector.broadcast %cst_36 : f32 to vector<8x8xf32>
    %61 = arith.cmpf oge, %59, %60 : vector<8x8xf32>
    %cst_37 = arith.constant 2.000000e-01 : f32
    %62 = vector.broadcast %cst_37 : f32 to vector<8x8xf32>
    %63 = arith.mulf %62, %59 : vector<8x8xf32>
    %64 = arith.select %61, %59, %63 : vector<8x8xi1>, vector<8x8xf32>
    %cst_38 = arith.constant 0.000000e+00 : f32
    %65 = vector.broadcast %cst_38 : f32 to vector<8x8xf32>
    %66 = arith.cmpf ogt, %3, %65 : vector<8x8xf32>
    %cst_39 = arith.constant -1.000000e+30 : f32
    %67 = vector.broadcast %cst_39 : f32 to vector<8x8xf32>
    %68 = arith.select %66, %64, %67 : vector<8x8xi1>, vector<8x8xf32>
    %cst_40 = arith.constant dense<0xFF800000> : vector<8xf32>
    %69 = vector.multi_reduction <maximumf>, %68, %cst_40 [1] : vector<8x8xf32> to vector<8xf32>
    %70 = vector.shape_cast %69 : vector<8xf32> to vector<8x1xf32>
    %71 = vector.broadcast %70 : vector<8x1xf32> to vector<8x8xf32>
    %72 = arith.subf %68, %71 : vector<8x8xf32>
    %73 = math.exp %72 : vector<8x8xf32>
    %74 = arith.mulf %73, %3 : vector<8x8xf32>
    %cst_41 = arith.constant dense<0.000000e+00> : vector<8xf32>
    %75 = vector.multi_reduction <add>, %74, %cst_41 [1] : vector<8x8xf32> to vector<8xf32>
    %76 = vector.shape_cast %75 : vector<8xf32> to vector<8x1xf32>
    %cst_42 = arith.constant 0.000000e+00 : f32
    %77 = vector.broadcast %cst_42 : f32 to vector<8x1xf32>
    %78 = arith.cmpf ogt, %76, %77 : vector<8x1xf32>
    %cst_43 = arith.constant 1.000000e+00 : f32
    %79 = vector.broadcast %cst_43 : f32 to vector<8x1xf32>
    %80 = arith.divf %79, %76 : vector<8x1xf32>
    %cst_44 = arith.constant 0.000000e+00 : f32
    %81 = vector.broadcast %cst_44 : f32 to vector<8x1xf32>
    %82 = arith.select %78, %80, %81 : vector<8x1xi1>, vector<8x1xf32>
    %83 = vector.broadcast %82 : vector<8x1xf32> to vector<8x8xf32>
    %84 = arith.mulf %74, %83 : vector<8x8xf32>
    %cst_45 = arith.constant dense<0.000000e+00> : vector<8x32xf32>
    %85 = tpu.matmul %84, %50, %cst_45 {dimension_numbers = #tpu.dot_dimension_numbers<[1], [0], [0], [1], [0, 0, 1, 1], [], []>} : vector<8x8xf32>, vector<8x32xf32>, vector<8x32xf32> -> vector<8x32xf32>
    %86 = vector.broadcast %49 : vector<1x32xf32> to vector<8x32xf32>
    %87 = arith.addf %85, %86 : vector<8x32xf32>
    %c0_46 = arith.constant 0 : index
    %c0_47 = arith.constant 0 : index
    %88 = vector.load %arg11[%c0_46, %c0_47] : memref<32x32xf32, #tpu.memory_space<vmem>>, vector<32x32xf32>
    %c0_48 = arith.constant 0 : index
    %c0_49 = arith.constant 0 : index
    %89 = vector.load %arg12[%c0_48, %c0_49] : memref<1x32xf32, #tpu.memory_space<vmem>>, vector<1x32xf32>
    %c0_50 = arith.constant 0 : index
    %c0_51 = arith.constant 0 : index
    %90 = vector.load %arg13[%c0_50, %c0_51] : memref<1x32xf32, #tpu.memory_space<vmem>>, vector<1x32xf32>
    %c0_52 = arith.constant 0 : index
    %c0_53 = arith.constant 0 : index
    %91 = vector.load %arg14[%c0_52, %c0_53] : memref<1x32xf32, #tpu.memory_space<vmem>>, vector<1x32xf32>
    %cst_54 = arith.constant dense<0.000000e+00> : vector<8x32xf32>
    %92 = tpu.matmul %87, %88, %cst_54 {dimension_numbers = #tpu.dot_dimension_numbers<[1], [0], [0], [1], [0, 0, 1, 1], [], []>} : vector<8x32xf32>, vector<32x32xf32>, vector<8x32xf32> -> vector<8x32xf32>
    %93 = vector.broadcast %90 : vector<1x32xf32> to vector<8x32xf32>
    %94 = arith.mulf %92, %93 : vector<8x32xf32>
    %cst_55 = arith.constant dense<0.000000e+00> : vector<8xf32>
    %95 = vector.multi_reduction <add>, %94, %cst_55 [1] : vector<8x32xf32> to vector<8xf32>
    %96 = vector.shape_cast %95 : vector<8xf32> to vector<8x1xf32>
    %97 = tpu.transpose %92, [1, 0] : vector<8x32xf32> -> vector<32x8xf32>
    %cst_56 = arith.constant dense<0.000000e+00> : vector<1x8xf32>
    %98 = tpu.matmul %89, %97, %cst_56 {dimension_numbers = #tpu.dot_dimension_numbers<[1], [0], [0], [1], [0, 0, 1, 1], [], []>} : vector<1x32xf32>, vector<32x8xf32>, vector<1x8xf32> -> vector<1x8xf32>
    %99 = vector.broadcast %96 : vector<8x1xf32> to vector<8x8xf32>
    %100 = vector.broadcast %98 : vector<1x8xf32> to vector<8x8xf32>
    %101 = arith.addf %99, %100 : vector<8x8xf32>
    %cst_57 = arith.constant 0.000000e+00 : f32
    %102 = vector.broadcast %cst_57 : f32 to vector<8x8xf32>
    %103 = arith.cmpf oge, %101, %102 : vector<8x8xf32>
    %cst_58 = arith.constant 2.000000e-01 : f32
    %104 = vector.broadcast %cst_58 : f32 to vector<8x8xf32>
    %105 = arith.mulf %104, %101 : vector<8x8xf32>
    %106 = arith.select %103, %101, %105 : vector<8x8xi1>, vector<8x8xf32>
    %cst_59 = arith.constant 0.000000e+00 : f32
    %107 = vector.broadcast %cst_59 : f32 to vector<8x8xf32>
    %108 = arith.cmpf ogt, %3, %107 : vector<8x8xf32>
    %cst_60 = arith.constant -1.000000e+30 : f32
    %109 = vector.broadcast %cst_60 : f32 to vector<8x8xf32>
    %110 = arith.select %108, %106, %109 : vector<8x8xi1>, vector<8x8xf32>
    %cst_61 = arith.constant dense<0xFF800000> : vector<8xf32>
    %111 = vector.multi_reduction <maximumf>, %110, %cst_61 [1] : vector<8x8xf32> to vector<8xf32>
    %112 = vector.shape_cast %111 : vector<8xf32> to vector<8x1xf32>
    %113 = vector.broadcast %112 : vector<8x1xf32> to vector<8x8xf32>
    %114 = arith.subf %110, %113 : vector<8x8xf32>
    %115 = math.exp %114 : vector<8x8xf32>
    %116 = arith.mulf %115, %3 : vector<8x8xf32>
    %cst_62 = arith.constant dense<0.000000e+00> : vector<8xf32>
    %117 = vector.multi_reduction <add>, %116, %cst_62 [1] : vector<8x8xf32> to vector<8xf32>
    %118 = vector.shape_cast %117 : vector<8xf32> to vector<8x1xf32>
    %cst_63 = arith.constant 0.000000e+00 : f32
    %119 = vector.broadcast %cst_63 : f32 to vector<8x1xf32>
    %120 = arith.cmpf ogt, %118, %119 : vector<8x1xf32>
    %cst_64 = arith.constant 1.000000e+00 : f32
    %121 = vector.broadcast %cst_64 : f32 to vector<8x1xf32>
    %122 = arith.divf %121, %118 : vector<8x1xf32>
    %cst_65 = arith.constant 0.000000e+00 : f32
    %123 = vector.broadcast %cst_65 : f32 to vector<8x1xf32>
    %124 = arith.select %120, %122, %123 : vector<8x1xi1>, vector<8x1xf32>
    %125 = vector.broadcast %124 : vector<8x1xf32> to vector<8x8xf32>
    %126 = arith.mulf %116, %125 : vector<8x8xf32>
    %cst_66 = arith.constant dense<0.000000e+00> : vector<8x32xf32>
    %127 = tpu.matmul %126, %92, %cst_66 {dimension_numbers = #tpu.dot_dimension_numbers<[1], [0], [0], [1], [0, 0, 1, 1], [], []>} : vector<8x8xf32>, vector<8x32xf32>, vector<8x32xf32> -> vector<8x32xf32>
    %128 = vector.broadcast %91 : vector<1x32xf32> to vector<8x32xf32>
    %129 = arith.addf %127, %128 : vector<8x32xf32>
    %c0_67 = arith.constant 0 : index
    %c0_68 = arith.constant 0 : index
    %c0_69 = arith.constant 0 : index
    %130 = vector.load %arg15[%c0_67, %c0_68, %c0_69] : memref<1x8x32xf32, #tpu.memory_space<vmem>>, vector<1x8x32xf32>
    %131 = vector.shape_cast %130 : vector<1x8x32xf32> to vector<8x32xf32>
    %132 = vector.shape_cast %129 : vector<8x32xf32> to vector<1x8x32xf32>
    tpu.vector_store %arg15[%c0_67, %c0_68, %c0_69], %132 {strides = array<i32>} : memref<1x8x32xf32, #tpu.memory_space<vmem>>, vector<1x8x32xf32>,
    return
  }
  func.func @transform_0(%arg0: i32) -> (i32, i32, i32) {
    %c0_i32 = arith.constant 0 : i32
    %c0_i32_0 = arith.constant 0 : i32
    %c0_i32_1 = arith.constant 0 : i32
    return %arg0, %c0_i32, %c0_i32_0 : i32, i32, i32
  }
  func.func @transform_1(%arg0: i32) -> (i32, i32, i32) {
    %c0_i32 = arith.constant 0 : i32
    %c0_i32_0 = arith.constant 0 : i32
    %c0_i32_1 = arith.constant 0 : i32
    return %arg0, %c0_i32, %c0_i32_0 : i32, i32, i32
  }
  func.func @transform_2(%arg0: i32) -> (i32, i32) {
    %c0_i32 = arith.constant 0 : i32
    %c0_i32_0 = arith.constant 0 : i32
    %c0_i32_1 = arith.constant 0 : i32
    return %c0_i32, %c0_i32_0 : i32, i32
  }
  func.func @transform_3(%arg0: i32) -> (i32, i32) {
    %c0_i32 = arith.constant 0 : i32
    %c0_i32_0 = arith.constant 0 : i32
    %c0_i32_1 = arith.constant 0 : i32
    return %c0_i32, %c0_i32_0 : i32, i32
  }
  func.func @transform_4(%arg0: i32) -> (i32, i32) {
    %c0_i32 = arith.constant 0 : i32
    %c0_i32_0 = arith.constant 0 : i32
    %c0_i32_1 = arith.constant 0 : i32
    return %c0_i32, %c0_i32_0 : i32, i32
  }
  func.func @transform_5(%arg0: i32) -> (i32, i32) {
    %c0_i32 = arith.constant 0 : i32
    %c0_i32_0 = arith.constant 0 : i32
    %c0_i32_1 = arith.constant 0 : i32
    return %c0_i32, %c0_i32_0 : i32, i32
  }
  func.func @transform_6(%arg0: i32) -> (i32, i32) {
    %c0_i32 = arith.constant 0 : i32
    %c0_i32_0 = arith.constant 0 : i32
    %c0_i32_1 = arith.constant 0 : i32
    return %c0_i32, %c0_i32_0 : i32, i32
  }
  func.func @transform_7(%arg0: i32) -> (i32, i32) {
    %c0_i32 = arith.constant 0 : i32
    %c0_i32_0 = arith.constant 0 : i32
    %c0_i32_1 = arith.constant 0 : i32
    return %c0_i32, %c0_i32_0 : i32, i32
  }
  func.func @transform_8(%arg0: i32) -> (i32, i32) {
    %c0_i32 = arith.constant 0 : i32
    %c0_i32_0 = arith.constant 0 : i32
    %c0_i32_1 = arith.constant 0 : i32
    return %c0_i32, %c0_i32_0 : i32, i32
  }
  func.func @transform_9(%arg0: i32) -> (i32, i32) {
    %c0_i32 = arith.constant 0 : i32
    %c0_i32_0 = arith.constant 0 : i32
    %c0_i32_1 = arith.constant 0 : i32
    return %c0_i32, %c0_i32_0 : i32, i32
  }
  func.func @transform_10(%arg0: i32) -> (i32, i32) {
    %c0_i32 = arith.constant 0 : i32
    %c0_i32_0 = arith.constant 0 : i32
    %c0_i32_1 = arith.constant 0 : i32
    return %c0_i32, %c0_i32_0 : i32, i32
  }
  func.func @transform_11(%arg0: i32) -> (i32, i32) {
    %c0_i32 = arith.constant 0 : i32
    %c0_i32_0 = arith.constant 0 : i32
    %c0_i32_1 = arith.constant 0 : i32
    return %c0_i32, %c0_i32_0 : i32, i32
  }
  func.func @transform_12(%arg0: i32) -> (i32, i32) {
    %c0_i32 = arith.constant 0 : i32
    %c0_i32_0 = arith.constant 0 : i32
    %c0_i32_1 = arith.constant 0 : i32
    return %c0_i32, %c0_i32_0 : i32, i32
  }
  func.func @transform_13(%arg0: i32) -> (i32, i32) {
    %c0_i32 = arith.constant 0 : i32
    %c0_i32_0 = arith.constant 0 : i32
    %c0_i32_1 = arith.constant 0 : i32
    return %c0_i32, %c0_i32_0 : i32, i32
  }
  func.func @transform_14(%arg0: i32) -> (i32, i32, i32) {
    %c0_i32 = arith.constant 0 : i32
    %c0_i32_0 = arith.constant 0 : i32
    %c0_i32_1 = arith.constant 0 : i32
    return %arg0, %c0_i32, %c0_i32_0 : i32, i32, i32
  }
}

</mosaic_0001>

<bundles_post_ra>
// kernel: tpu_custom_call.1
= control target key start
LH: loop header
LB: loop body
LE: loop exit
PB: predicated region body
PF: predicated region fallthrough
CT: control target
= control target key end

     0   :  { %s2602_s0 = inlined_call_operand.vmem [shape: f32[2,8,6], index: 0, kind: input, shape index: {}]   ;;  %s2603_s1 = inlined_call_operand.hbm [shape: f32[2,8,8], index: 1, kind: input, shape index: {}]   ;;  %s2604_s2 = inlined_call_operand.hbm [shape: f32[6,32], index: 2, kind: input, shape index: {}]   ;;  %s2605_s3 = inlined_call_operand.vmem [shape: f32[1,32], index: 3, kind: input, shape index: {}]   ;;  %s2606_s4 = inlined_call_operand.hbm [shape: f32[1,32], index: 4, kind: input, shape index: {}]   ;;  %s2607_s5 = inlined_call_operand.hbm [shape: f32[1,32], index: 5, kind: input, shape index: {}]   ;;  %s2608_s6 = inlined_call_operand.vmem [shape: f32[32,32], index: 6, kind: input, shape index: {}]   ;;  %s2609_s7 = inlined_call_operand.hbm [shape: f32[1,32], index: 7, kind: input, shape index: {}]   ;;  %s2610_s8 = inlined_call_operand.hbm [shape: f32[1,32], index: 8, kind: input, shape index: {}]   ;;  %s2611_s9 = inlined_call_operand.hbm [shape: f32[1,32], index: 9, kind: input, shape index: {}]   ;;  %s2612_s10 = inlined_call_operand.vmem [shape: f32[32,32], index: 10, kind: input, shape index: {}]   ;;  %s2613_s11 = inlined_call_operand.vmem [shape: f32[1,32], index: 11, kind: input, shape index: {}]   ;;  %s2614_s12 = inlined_call_operand.vmem [shape: f32[1,32], index: 12, kind: input, shape index: {}]   ;;  %s2615_s13 = inlined_call_operand.vmem [shape: f32[1,32], index: 13, kind: input, shape index: {}]   ;;  %s2616_s14 = inlined_call_operand.hbm [shape: f32[2,8,32], index: 14, kind: output, shape index: {}]  }
   0x1   :  { %2622 = sst [smem:[#allocation20_spill]] %s2604_s2 }
   0x2   :  { %2623 = sst [smem:[#allocation21_spill]] %s2606_s4 }
   0x3   :  { %2624 = sst [smem:[#allocation22_spill]] %s2612_s10 }
   0x4   :  { %2625 = sst [smem:[#allocation23_spill]] %s2613_s11 }
   0x5   :  { %2626 = sst [smem:[#allocation24_spill]] %s2614_s12 }
   0x6   :  { %2627 = sst [smem:[#allocation25_spill]] %s2615_s13 }
   0x7   :  { %2628 = sst [smem:[#allocation26_spill]] %s2616_s14 }
   0x8   :  { %19 = vsyncpa [#allocation3], 0 }
   0x9   :  { %21 = vsyncpa [#allocation3 + $0x1], 0 }
   0xa   :  { %22 = vsyncpa [#allocation6], 0 }
   0xb   :  { %23 = vsyncpa [#allocation9], 0 }
   0xc   :  { %24 = vsyncpa [#allocation12], 0 }
   0xd   :  { %25 = vsyncpa [#allocation4], 0 }
   0xe   :  { %27 = vsyncpa [#allocation4 + $0x1], 0  ;;  %s2166_s29 = smov 0   ;;  %s2168_s30 = smov 0  }
   0xf   :  { %s2170_s15 = smov 0   ;;  %s2172_s16 = smov 0  }
  0x10 LB: > { %s2080_s17 = smov [#allocation5]   ;;  %s2187_s19 = sadd.s32 4294967295, %s2078_s16   ;;  %s2078_s16 = sphi %s2172_s16, %s2658_s16   ;;  %s2074_s15 = sphi %s2170_s15, %s2657_s15   ;;  %s2070_s30 = sphi %s2168_s30, %s2656_s30   ;;  %s2066_s29 = sphi %s2166_s29, %s2655_s29  }
  0x11   : > { %s381_s18 = sshll.u32 %s2080_s17, 4  ;;  %p1544_p0 = scmp.ge.s32.totalorder %s2078_s16, 1  ;;  %s2192_s18 = int_to_ptr.vmem [resolvable:$true] %s381_s18 }
  0x12   : > { %p2619_p1 = scmp.eq.s32.totalorder %s2187_s19, 0  ;;  %p368_p2 = scmp.lt.s32.totalorder %s2078_s16, 3 }
  0x13   : > { %s2081_s21 = smov [#allocation8]   ;;  %s2082_s23 = smov [#allocation11]  }
  0x14   : > { %p2194_p3 = pnand %p1544_p0, %p368_p2  ;;  %s406_s22 = sshll.u32 %s2081_s21, 4  ;;  %s2201_s22 = int_to_ptr.vmem [resolvable:$true] %s406_s22 }
  0x15   : > { %s431_s24 = sshll.u32 %s2082_s23, 4  ;;  %s2083_s26 = smov [#allocation7]   ;;  %s2209_s24 = int_to_ptr.vmem [resolvable:$true] %s431_s24 }
  0x16   : > { %s2629_s20 = scalar_select %p2194_p3, 1, 0 }
  0x17   : > { %p1708_p5 = pneg %p2194_p3  ;;  %s2211_s27 = sshll.u32 %s2083_s26, 4  ;;  %s396_s27 = int_to_ptr.vmem [resolvable:$true] %s2211_s27 }
  0x18   : > { %s2631_s2 = sld [smem:[#allocation20_spill]] }
  0x19   : > { %p2205_p6 = pnand %p1708_p5, %p2619_p1 }
  0x1b   : > { %p2221_p8 = pneg %p2205_p6 }
  0x1e   : > { %s1802_s14 = scalar_lea.hbm %s2631_s2, 128 }
  0x1f   : > { %p1803_p7 = scmp.ne.s32.totalorder %s2631_s2, %s1802_s14  ;;  %p1809_p11 = scmp.lt.u32.totalorder %s1802_s14, %s2631_s2 }
  0x21   : > { %p1805_p9 = pnand %p2221_p8, %p1803_p7 }
  0x23   : > { %p1806_p10 = pneg %p1805_p9 }
  0x25   : > { %p1811_p12 = pnand %p1809_p11, %p1806_p10 }
  0x27   : > { %1814 = shalt.err (!%p1811_p12)
}
  0x28   : > { %s1815_s13 = scalar_lea.vmem %s2192_s18, 128  ;;  %p1823_p5 = scmp.lt.s32.totalorder %s2192_s18, %s2192_s18 }
  0x29   : > { %p1816_p13 = scmp.ne.s32.totalorder %s2192_s18, %s1815_s13  ;;  %p1824_p4 = scmp.lt.s32.totalorder %s1815_s13, %s1815_s13 }
  0x2b   : > { %p1818_p0 = pnand %p1816_p13, %p2221_p8  ;;  %p1825_p7 = por %p1824_p4, %p1823_p5 }
  0x2d   : > { %p1819_p2 = pneg %p1818_p0 }
  0x2f   : > { %p1826_p9 = pnand %p1825_p7, %p1819_p2 }
  0x31   : > { %1829 = shalt.err (!%p1826_p9)
}
  0x32   : > { %1711 = dma.hbm_to_vmem [thread:$0]  (!%p2205_p6), %s2631_s2, 128, %s2192_s18, [#allocation6]  }
  0x33   : > { %s1830_s21 = scalar_lea.hbm %s2607_s5, 16 }
  0x34   : > { %p1831_p10 = scmp.ne.s32.totalorder %s2607_s5, %s1830_s21  ;;  %p1837_p12 = scmp.lt.u32.totalorder %s1830_s21, %s2607_s5 }
  0x36   : > { %p1833_p4 = pnand %p1831_p10, %p2221_p8 }
  0x38   : > { %p1834_p11 = pneg %p1833_p4 }
  0x3a   : > { %p1839_p13 = pnand %p1837_p12, %p1834_p11 }
  0x3c   : > { %1842 = shalt.err (!%p1839_p13)
}
  0x3d   : > { %s1843_s18 = scalar_lea.vmem %s2201_s22, 16  ;;  %s1850_s12 = scalar_lea.vmem %s2201_s22, 32 }
  0x3e   : > { %p1844_p0 = scmp.ne.s32.totalorder %s2201_s22, %s1843_s18  ;;  %p1851_p7 = scmp.lt.s32.totalorder %s2201_s22, %s2201_s22 }
  0x3f   : > { %p1852_p9 = scmp.lt.s32.totalorder %s1850_s12, %s1843_s18 }
  0x40   : > { %p1846_p2 = pnand %p1844_p0, %p2221_p8 }
  0x41   : > { %p1853_p10 = por %p1852_p9, %p1851_p7 }
  0x42   : > { %p1847_p5 = pneg %p1846_p2 }
  0x44   : > { %p1854_p4 = pnand %p1853_p10, %p1847_p5 }
  0x46   : > { %1857 = shalt.err (!%p1854_p4)
}
  0x47   : > { %1717 = dma.hbm_to_vmem [thread:$0]  (!%p2205_p6), %s2607_s5, 16, %s2201_s22, [#allocation9]  }
  0x48   : > { %s1858_s17 = scalar_lea.hbm %s2610_s8, 16 }
  0x49   : > { %p1859_p11 = scmp.ne.s32.totalorder %s2610_s8, %s1858_s17  ;;  %p1865_p0 = scmp.lt.u32.totalorder %s1858_s17, %s2610_s8 }
  0x4b   : > { %p1861_p12 = pnand %p1859_p11, %p2221_p8 }
  0x4d   : > { %p1862_p13 = pneg %p1861_p12 }
  0x4f   : > { %p1867_p2 = pnand %p1865_p0, %p1862_p13 }
  0x51   : > { %1870 = shalt.err (!%p1867_p2)
}
  0x52   : > { %s1871_s22 = scalar_lea.vmem %s2209_s24, 16  ;;  %s1878_s12 = scalar_lea.vmem %s2209_s24, 32 }
  0x53   : > { %p1872_p5 = scmp.ne.s32.totalorder %s2209_s24, %s1871_s22  ;;  %p1879_p10 = scmp.lt.s32.totalorder %s2209_s24, %s2209_s24 }
  0x54   : > { %p1880_p4 = scmp.lt.s32.totalorder %s1878_s12, %s1871_s22 }
  0x55   : > { %p1874_p7 = pnand %p1872_p5, %p2221_p8 }
  0x56   : > { %p1881_p11 = por %p1880_p4, %p1879_p10 }
  0x57   : > { %p1875_p9 = pneg %p1874_p7 }
  0x59   : > { %p1882_p12 = pnand %p1881_p11, %p1875_p9 }
  0x5b   : > { %1885 = shalt.err (!%p1882_p12)
}
  0x5c   : > { %1723 = dma.hbm_to_vmem [thread:$0]  (!%p2205_p6), %s2610_s8, 16, %s2209_s24, [#allocation12]  }
  0x5d   : > { %s2084_s14 = smov [#allocation10]   ;;  %s2633_s4 = sld [smem:[#allocation21_spill]] }
  0x5e   : > { %s420_s28 = sshll.u32 %s2084_s14, 4  ;;  %s421_s28 = int_to_ptr.vmem [resolvable:$true] %s420_s28 }
  0x63   : > { %s1886_s26 = scalar_lea.hbm %s2633_s4, 16 }
  0x64   : > { %p1887_p13 = scmp.ne.s32.totalorder %s2633_s4, %s1886_s26  ;;  %p1893_p5 = scmp.lt.u32.totalorder %s1886_s26, %s2633_s4 }
  0x66   : > { %p1889_p0 = pnand %p1887_p13, %p2221_p8 }
  0x68   : > { %p1890_p2 = pneg %p1889_p0 }
  0x6a   : > { %p1895_p7 = pnand %p1893_p5, %p1890_p2 }
  0x6c   : > { %1898 = shalt.err (!%p1895_p7)
}
  0x6d   : > { %s1899_s24 = scalar_lea.vmem %s396_s27, 16  ;;  %s1906_s10 = scalar_lea.vmem %s396_s27, 32 }
  0x6e   : > { %p1900_p9 = scmp.ne.s32.totalorder %s396_s27, %s1899_s24  ;;  %p1907_p11 = scmp.lt.s32.totalorder %s396_s27, %s396_s27 }
  0x6f   : > { %p1908_p12 = scmp.lt.s32.totalorder %s1906_s10, %s1899_s24 }
  0x70   : > { %p1902_p10 = pnand %p1900_p9, %p2221_p8 }
  0x71   : > { %p1909_p1 = por %p1908_p12, %p1907_p11 }
  0x72   : > { %p1903_p4 = pneg %p1902_p10 }
  0x74   : > { %p1910_p3 = pnand %p1909_p1, %p1903_p4 }
  0x76   : > { %1913 = shalt.err (!%p1910_p3)
}
  0x77   : > { %1714 = dma.hbm_to_vmem [thread:$0]  (!%p2205_p6), %s2633_s4, 16, %s396_s27, [#allocation6]  }
  0x78   : > { %s1914_s26 = scalar_lea.hbm %s2609_s7, 16 }
  0x79   : > { %p1915_p13 = scmp.ne.s32.totalorder %s2609_s7, %s1914_s26  ;;  %p1921_p3 = scmp.lt.u32.totalorder %s1914_s26, %s2609_s7 }
  0x7b   : > { %p1917_p0 = pnand %p1915_p13, %p2221_p8 }
  0x7d   : > { %p1918_p1 = pneg %p1917_p0 }
  0x7f   : > { %p1923_p2 = pnand %p1921_p3, %p1918_p1 }
  0x81   : > { %1926 = shalt.err (!%p1923_p2)
}
  0x82   : > { %s1927_s24 = scalar_lea.vmem %s421_s28, 16  ;;  %s1934_s27 = scalar_lea.vmem %s421_s28, 32 }
  0x83   : > { %p1928_p5 = scmp.ne.s32.totalorder %s421_s28, %s1927_s24  ;;  %p1935_p10 = scmp.lt.s32.totalorder %s421_s28, %s421_s28 }
  0x84   : > { %p1936_p4 = scmp.lt.s32.totalorder %s1934_s27, %s1927_s24 }
  0x85   : > { %p1930_p7 = pnand %p1928_p5, %p2221_p8 }
  0x86   : > { %p1937_p11 = por %p1936_p4, %p1935_p10 }
  0x87   : > { %p1931_p9 = pneg %p1930_p7 }
  0x89   : > { %p1938_p12 = pnand %p1937_p11, %p1931_p9 }
  0x8b   : > { %1941 = shalt.err (!%p1938_p12)
}
  0x8c   : > { %1720 = dma.hbm_to_vmem [thread:$0]  (!%p2205_p6), %s2609_s7, 16, %s421_s28, [#allocation9]  }
  0x8d   : > { %s2085_s14 = smov [#allocation13]   ;;  %s1942_s13 = scalar_lea.hbm %s2611_s9, 16 }
  0x8e   : > { %s442_s17 = sshll.u32 %s2085_s14, 4  ;;  %p1943_p13 = scmp.ne.s32.totalorder %s2611_s9, %s1942_s13  ;;  %s443_s17 = int_to_ptr.vmem [resolvable:$true] %s442_s17 }
  0x8f   : > { %p1949_p3 = scmp.lt.u32.totalorder %s1942_s13, %s2611_s9 }
  0x90   : > { %p1945_p0 = pnand %p1943_p13, %p2221_p8 }
  0x92   : > { %p1946_p1 = pneg %p1945_p0 }
  0x94   : > { %p1951_p2 = pnand %p1949_p3, %p1946_p1 }
  0x96   : > { %1954 = shalt.err (!%p1951_p2)
}
  0x97   : > { %s1955_s28 = scalar_lea.vmem %s443_s17, 16  ;;  %s1962_s27 = scalar_lea.vmem %s443_s17, 32 }
  0x98   : > { %p1956_p5 = scmp.ne.s32.totalorder %s443_s17, %s1955_s28  ;;  %p1963_p10 = scmp.lt.s32.totalorder %s443_s17, %s443_s17 }
  0x99   : > { %p1964_p4 = scmp.lt.s32.totalorder %s1962_s27, %s1955_s28 }
  0x9a   : > { %p1958_p7 = pnand %p1956_p5, %p2221_p8 }
  0x9b   : > { %p1965_p11 = por %p1964_p4, %p1963_p10 }
  0x9c   : > { %p1959_p9 = pneg %p1958_p7 }
  0x9e   : > { %p1966_p12 = pnand %p1965_p11, %p1959_p9 }
  0xa0   : > { %1969 = shalt.err (!%p1966_p12)
}
  0xa1   : > { %1726 = dma.hbm_to_vmem [thread:$0]  (!%p2205_p6), %s2611_s9, 16, %s443_s17, [#allocation12]  }
  0xa2   : > { %s1543_s23 = sadd.s32 4294967294, %s2078_s16   ;;  %s2347_s25 = sadd.s32 1, %s2078_s16  }
  0xa3   : > { %s63_s14 = ssub.s32 %s2078_s16, %s2347_s25  ;;  %s66_s21 = sadd.s32 1, %s2074_s15 }
  0xa4   : > { %p64_p8 = scmp.eq.s32.totalorder %s63_s14, 0  ;;  %p73_p13 = scmp.ne.s32.totalorder %s2074_s15, %s2070_s30 }
  0xa5   : > { %p74_p0 = scmp.eq.s32.totalorder %s2078_s16, 0  ;;  %p79_p1 = scmp.ne.s32.totalorder %s2070_s30, %s2066_s29 }
  0xa6   : > { %s2358_s26 = scalar_select %p64_p8, %s2074_s15, %s66_s21  }
  0xa7   : > { %p2360_p3 = por %p74_p0, %p73_p13  ;;  %p2635_p2 = scmp.eq.s32.totalorder %s2187_s19, 0 }
  0xa8   : > { %p355_p5 = scmp.eq.s32.totalorder %s2187_s19, 1  ;;  %p361_p7 = scmp.eq.s32.totalorder %s1543_s23, 1 }
  0xa9   : > { %p2366_p6 = por %p2635_p2, %p79_p1  ;;  %p1741_p9 = scmp.lt.s32.totalorder %s2078_s16, 2 }
  0xaa   : > { %s472_s18 = sand.u32 1, %s2074_s15   ;;  %p2373_p10 = por %p355_p5, %p73_p13 }
  0xab   : > { %p2377_p4 = por %p361_p7, %p79_p1  ;;  %s1552_s24 = sshll.u32 %s472_s18, 3 }
  0xac   : > { %s2637_s22 = scalar_select %p2373_p10, 1, 0 }
  0xad   : > { %s2638_s12 = scalar_select %p2377_p4, 1, 0 }
  0xae   : > { %s1553_s28 = sshll.u32 %s2078_s16, 7  ;;  %s476_s23 = scalar_lea.vmem [#allocation2], %s1552_s24 }
  0xaf   : > { %s2385_s11 = scalar_lea.hbm %s2603_s1, %s1553_s28  ;;  %s483_s14 = sshll.u32 %s476_s23, 4  ;;  %s2387_s14 = int_to_ptr.vmem [resolvable:$true] %s483_s14 }
  0xb0   : > { %p2391_p11 = pnand %p1741_p9, %p2360_p3  ;;  %s473_s2 = scalar_lea.sflag [#allocation3], %s472_s18 }
  0xb1   : > { %s1970_s4 = scalar_lea.hbm %s2385_s11, 128  ;;  %s1975_s27 = scalar_lea.hbm %s2603_s1, 256 }
  0xb2   : > { %p1971_p12 = scmp.ne.s32.totalorder %s2385_s11, %s1970_s4  ;;  %p1972_p8 = pneg %p2391_p11 }
  0xb3   : > { %p1976_p1 = scmp.lt.u32.totalorder %s2385_s11, %s2603_s1  ;;  %p1977_p3 = scmp.lt.u32.totalorder %s1975_s27, %s1970_s4 }
  0xb4   : > { %p1973_p13 = pnand %p1972_p8, %p1971_p12  ;;  %p1979_p5 = scmp.lt.u32.totalorder %s1970_s4, %s2385_s11 }
  0xb5   : > { %p1978_p2 = por %p1977_p3, %p1976_p1 }
  0xb6   : > { %p1974_p0 = pneg %p1973_p13 }
  0xb7   : > { %p1980_p7 = por %p1979_p5, %p1978_p2 }
  0xb9   : > { %p1981_p9 = pnand %p1980_p7, %p1974_p0 }
  0xbb   : > { %1984 = shalt.err (!%p1981_p9)
}
  0xbc   : > { %s1985_s18 = scalar_lea.vmem %s2387_s14, 128  ;;  %s2086_s23 = smov [#allocation2]  }
  0xbd   : > { %p1986_p12 = scmp.ne.s32.totalorder %s2387_s14, %s1985_s18  ;;  %s1990_s24 = sshll.u32 %s2086_s23, 4  ;;  %s1991_s24 = int_to_ptr.vmem [resolvable:$false] %s1990_s24 }
  0xbe   : > { %s1992_s28 = scalar_lea.vmem %s1991_s24, 256  ;;  %p1993_p10 = scmp.lt.s32.totalorder %s2387_s14, %s1991_s24 }
  0xbf   : > { %p1988_p13 = pnand %p1986_p12, %p1972_p8  ;;  %p1994_p1 = scmp.lt.s32.totalorder %s1992_s28, %s1985_s18 }
  0xc1   : > { %p1989_p4 = pneg %p1988_p13  ;;  %p1995_p3 = por %p1994_p1, %p1993_p10 }
  0xc3   : > { %p1996_p2 = pnand %p1995_p3, %p1989_p4 }
  0xc5   : > { %1999 = shalt.err (!%p1996_p2)
}
  0xc6   : > { %1730 = dma.hbm_to_vmem [thread:$0]  (!%p2391_p11), %s2385_s11, 128, %s2387_s14, %s473_s2  }
  0xc7   : > { %p2640_p0 = scmp.ne.s32.totalorder %s2629_s20, 0 }
  0xc8   : > { %s2423_s4 = sand.u32 (!%p2640_p0), 1, %s2070_s30  }
  0xc9   : > { %492 = sbr.rel (%p2640_p0) target bundleno = 3138 (0xc42), region = 76  ;;  %s1555_s27 = sshll.u32 (!%p2640_p0), %s2423_s4, 3 }
  0xca   : > { %s495_s13 = scalar_lea.sflag (!%p2640_p0), [#allocation3], %s2423_s4  ;;  %s2429_s10 = scalar_lea.vmem (!%p2640_p0), [#allocation2], %s1555_s27 }
  0xd0   : > { %2045 = dma.done.wait (%p2366_p6), %s495_s13, 128  }
  0xd1   : > { %2047 = vsyncadd (%p2366_p6), %s495_s13, 4294967168  ;;  %p2641_p10 = scmp.eq.s32.totalorder %s2187_s19, 0 }
  0xd3   : > { %2049 = dma.done.wait (%p2641_p10), [#allocation6], 144   ;;  %p2642_p4 = pmov %p2641_p10 }
  0xd5   : > { %2051 = vsyncadd (%p2642_p4), [#allocation6], 4294967152  ;;  %p2643_p11 = pmov %p2642_p4 }
  0xd6   : > { %p2644_p8 = pmov %p2642_p4 }
  0xd7   : > { %2053 = dma.done.wait (%p2643_p11), [#allocation9], 32  }
  0xd8   : > { %2055 = vsyncadd (%p2644_p8), [#allocation9], 4294967264  ;;  %p2645_p5 = pmov %p2642_p4 }
  0xd9   : > { %p2646_p7 = pmov %p2642_p4 }
  0xda   : > { %2057 = dma.done.wait (%p2645_p5), [#allocation12], 32  }
  0xdb   : > { %2059 = vsyncadd (%p2646_p7), [#allocation12], 4294967264  ;;  %p571_p6 = scmp.lt.s32.totalorder %s2187_s19, 1  ;;  %v2087_v0 = vmov 0.0   ;;  %vm2088_vm0 = vmmov 0   ;;  %vm585_vm1 = vcmask 1045504   ;;  %v746_v9 = vlaneseq }
  0xdc   : > { %1611 = vmatprep.subr.mxu0 %v2087_v0  ;;  %1613 = vmatprep.mubr.msk.f32.mxu0 %vm2088_vm0, %v2087_v0  ;;  %vm581_vm2 = vcmask 48128   ;;  %v577_v1 = vld [vmem:[#allocation5] sm:$0x3f]  ;;  %vm666_vm3 = vcmask 261120   ;;  %v1566_v3 = vld [vmem:[#allocation7] ss:$0 sm:$0xff] }
  0xdd   : > { %s572_s2 = scalar_select %p571_p6, %s2187_s19, 1  ;;  %1616 = vmatprep.subr.mxu1 %v2087_v0  ;;  %1618 = vmatprep.mubr.msk.f32.mxu1 %vm2088_vm0, %v2087_v0  ;;  %v578_v6 = vld [vmem:[%s2605_s3] sm:$0x1]  ;;  %v747_v10 = vshrl.u32 %v746_v9, 7  ;;  %vm756_vm6 = vcmask 64512   ;;  %v852_v29 = vld [vmem:[%s2608_s6 + $0x8] sm:$0xff] }
  0xde   : > { %1612 = vmatpush3.msk.msra.mxu0 %vm585_vm1, %v577_v1  ;;  %v2474_v16 = vld [vmem:[%s2429_s10] sm:$0xff]  ;;  %v2089_v30 = vmov 0.0|0.0   ;;  %v853_v36 = vld [vmem:[%s2608_s6 + $0x10] sm:$0xff]  ;;  %v854_v37 = vld [vmem:[%s2608_s6 + $0x18] sm:$0xff]  ;;  %s2647_s21 = sld [smem:[#allocation22_spill]]  ;;  %s2648_s17 = sld [smem:[#allocation24_spill]] }
  0xdf   : > { %s1563_s20 = sshll.u32 %s572_s2, 3  ;;  %1621 = vmatprep.subr.mxu0 %v2087_v0  ;;  %v2470_v11 = vsub.s32 0, %v747_v10  ;;  %vm754_vm5 = vcmp.gt.f32.partialorder %v2474_v16, 0.0  ;;  %v851_v28 = vld [vmem:[%s2608_s6] sm:$0xff]  ;;  %v1672_v38 = vpack.c.bf16 %v854_v37, %v853_v36  ;;  %v1569_v39 = vld [vmem:[#allocation8] ss:$0 sm:$0xff] }
  0xe0   : > { %s574_s14 = scalar_lea.vmem %s2602_s0, %s1563_s20  ;;  %v1669_v31 = vpack.c.bf16 %v852_v29, %v851_v28  ;;  %v1572_v43 = vld [vmem:[#allocation11] ss:$0 sm:$0xff]  ;;  %v855_v46 = vld [vmem:[#allocation10] sm:$0x1]  ;;  %s2649_s18 = sld [smem:[#allocation23_spill]] }
  0xe1   : > { %v575_v2 = vld [vmem:[%s574_s14] sm:$0xff]  ;;  %s2650_s28 = sld [smem:[#allocation25_spill]]  ;;  %s1584_s13 = sshll.u32 %s2187_s19, 7 }
  0xe2   : > { %1614 = vmatmul.mubr.msk.f32.vlgmr.msra.gmra.mrb[0].mxu0 %vm581_vm2, %v575_v2  ;;  %s570_s10 = scalar_lea.vmem [#allocation14], %s1555_s27  ;;  %s2651_s11 = sld [smem:[#allocation26_spill]] }
  0xe3   : > { %1623 = vmatprep.mubr.msk.f32.mxu0 %vm2088_vm0, %v2087_v0  ;;  %s1404_s2 = sshll.u32 %s570_s10, 4  ;;  %p2652_p12 = scmp.ne.s32.totalorder %s2637_s22, 0  ;;  %s2559_s2 = int_to_ptr.vmem [resolvable:$true] %s1404_s2 }
  0xe4   : > { %v1120_v1 = vld [vmem:[%s2647_s21] sm:$0xff]  ;;  %v1121_v2 = vld [vmem:[%s2647_s21 + $0x8] sm:$0xff]  ;;  %v1123_v9 = vld [vmem:[%s2647_s21 + $0x18] sm:$0xff]  ;;  %s2000_s19 = scalar_lea.vmem %s2559_s2, 128  ;;  %s2090_s27 = smov [#allocation14]  }
  0xe5   : > { %p2001_p9 = scmp.ne.s32.totalorder %s2559_s2, %s2000_s19  ;;  %s2004_s23 = sshll.u32 %s2090_s27, 4  ;;  %s2005_s23 = int_to_ptr.vmem [resolvable:$false] %s2004_s23 }
  0xe6   : > { %s2006_s24 = scalar_lea.vmem %s2005_s23, 256  ;;  %p2007_p3 = scmp.lt.s32.totalorder %s2559_s2, %s2005_s23 }
  0xe7   : > { %p2002_p13 = pnand %p2001_p9, %p2652_p12  ;;  %p2008_p2 = scmp.lt.s32.totalorder %s2006_s24, %s2000_s19 }
  0xe8   : > { %s2557_s14 = scalar_lea.hbm %s2651_s11, %s1584_s13 }
  0xe9   : > { %p2003_p1 = pneg %p2002_p13  ;;  %p2009_p0 = por %p2008_p2, %p2007_p3 }
  0xeb   : > { %p2010_p10 = pnand %p2009_p0, %p2003_p1 }
 0x1b5   : > { %v655_v4 = vpop.f32.mrb[0].mxu0 }
 0x1b6   : > { %v1615_v5 = vpop.f32.mrb[1].mxu0  ;;  %1617 = vmatpush3.xpose.msk.msra.mxu1 %vm666_vm3, %v655_v4  ;;  %1622 = vmatpush3.msra.mxu0 %v655_v4  ;;  %v665_v7 = vmul.f32 %v1566_v3, %v655_v4  ;;  %v1675_v3 = vpack.c.bf16 %v1121_v2, %v1120_v1 }
 0x1b7   : > { %1637 = vmatprep.subr.mxu0 %v2087_v0  ;;  %1668 = vmatprep.subr.bf16.mxu1 %v2089_v30 }
 0x1b8   : > { %v667_v8 = vsel %vm666_vm3, %v665_v7, 0.0 }
 0x1b9   : > { %1619 = vmatmul.mubr.msk.f32.vlgmr.msra.gmra.mrb[0].mxu1 %vm666_vm3, %v578_v6  ;;  %668 = vadd.xlane.f32.xlu0 %v667_v8  ;;  %v1122_v8 = vld [vmem:[%s2647_s21 + $0x10] sm:$0xff] }
 0x1ba   : > { %1634 = vmatprep.mubr.msk.f32.mxu1 %vm2088_vm0, %v2087_v0  ;;  %1670 = vmatpush3.bf16.msra.mxu1 %v1669_v31  ;;  %v1678_v10 = vpack.c.bf16 %v1123_v9, %v1122_v8 }
 0x1bb   : > { %1671 = vmatprep.subr.bf16.mxu1 %v2089_v30 }
 0x1be   : > { %1673 = vmatpush3.bf16.msra.mxu1 %v1672_v38 }
 0x1bf   : > { %1674 = vmatprep.subr.bf16.mxu1 %v2089_v30 }
 0x246   : > { %v669_v15 = vpop.xlane.xlu0 %668 }
 0x28c   : > { %v742_v12 = vpop.f32.mrb[0].mxu1 }
 0x28d   : > { %v749_v13 = vrot.slane %v742_v12, %v2470_v11  ;;  %v1620_v14 = vpop.f32.mrb[1].mxu1  ;;  %v1575_v12 = vld [vmem:[#allocation13] ss:$0 sm:$0xff] }
 0x28f   : > { %v750_v17 = vadd.f32 %v749_v13, %v669_v15 }
 0x291   : > { %vm751_vm4 = vcmp.ge.f32.partialorder %v750_v17, 0.0  ;;  %v752_v18 = vmul.f32 0.2, %v750_v17 }
 0x293   : > { %v753_v19 = vsel %vm751_vm4, %v750_v17, %v752_v18  ;;  %v1578_v17 = vld [vmem:[%s2648_s17] ss:$0 sm:$0xff] }
 0x294   : > { %v755_v20 = vsel %vm754_vm5, %v753_v19, -1e+30 }
 0x295   : > { %v757_v21 = vsel %vm756_vm6, %v755_v20, -inf }
 0x296   : > { %758 = vmax.xlane.f32.xlu0 %v757_v21 }
 0x323   : > { %v759_v22 = vpop.xlane.xlu0 %758 }
 0x324   : > { %v760_v23 = vsub.f32 %v755_v20, %v759_v22  ;;  %v1124_v20 = vld [vmem:[%s2649_s18] sm:$0x1]  ;;  %s1391_s18 = scalar_lea.sflag [#allocation4], %s2423_s4 }
 0x326   : > { %v761_v24 = vmul.f32 1.442695, %v760_v23 }
 0x328   : > { %1790 = vpow2.f32 %v761_v24 }
 0x332   : > { %v1791_v25 = vpop.eup %1790 }
 0x333   : > { %v763_v26 = vmul.f32 %v1791_v25, %v2474_v16 }
 0x335   : > { %v764_v27 = vsel %vm756_vm6, %v763_v26, 0.0 }
 0x336   : > { %765 = vadd.xlane.f32.xlu1 %v764_v27 }
 0x3c3   : > { %v766_v32 = vpop.xlane.xlu1 %765 }
 0x3c4   : > { %1792 = vrcp.f32 %v766_v32  ;;  %vm767_vm7 = vcmp.gt.f32.partialorder %v766_v32, 0.0 }
 0x3ce   : > { %v1793_v33 = vpop.eup %1792 }
 0x3cf   : > { %v770_v34 = vsel %vm767_vm7, %v1793_v33, 0.0 }
 0x3d0   : > { %v771_v35 = vmul.f32 %v770_v34, %v763_v26 }
 0x3d2   : > { %1624 = vmatmul.mubr.msk.f32.vlgmr.msra.gmra.mrb[2].mxu0 %vm756_vm6, %v771_v35 }
 0x3d3   : > { %1639 = vmatprep.mubr.msk.f32.mxu0 %vm2088_vm0, %v2087_v0 }
 0x4a5   : > { %v847_v40 = vpop.f32.mrb[2].mxu0 }
 0x4a6   : > { %v848_v41 = vadd.f32 %v1569_v39, %v847_v40  ;;  %v1625_v42 = vpop.f32.mrb[3].mxu0  ;;  %v1581_v40 = vld [vmem:[%s2650_s28] ss:$0 sm:$0xff] }
 0x4a8   : > { %1635 = vmatmul.mubr.msk.f32.vlgmr.msra.gmra.mrb[2].mxu1 %vm666_vm3, %v848_v41 }
 0x4a9   : > { %1655 = vmatprep.mubr.msk.f32.mxu1 %vm2088_vm0, %v2087_v0  ;;  %1676 = vmatpush3.bf16.msra.mxu1 %v1675_v3 }
 0x4aa   : > { %1677 = vmatprep.subr.bf16.mxu1 %v2089_v30 }
 0x4ad   : > { %1679 = vmatpush3.bf16.msra.mxu1 %v1678_v10 }
 0x57b   : > { %v927_v44 = vpop.f32.mrb[2].mxu1 }
 0x57c   : > { %v1636_v45 = vpop.f32.mrb[3].mxu1  ;;  %1638 = vmatpush3.xpose.msk.msra.mxu0 %vm666_vm3, %v927_v44  ;;  %v937_v47 = vmul.f32 %v1572_v43, %v927_v44 }
 0x57d   : > { %1642 = vmatprep.subr.mxu0 %v2087_v0 }
 0x57e   : > { %v938_v48 = vsel %vm666_vm3, %v937_v47, 0.0 }
 0x57f   : > { %1640 = vmatmul.mubr.msk.f32.vlgmr.msra.gmra.mrb[4].mxu0 %vm666_vm3, %v855_v46  ;;  %939 = vadd.xlane.f32.xlu1 %v938_v48 }
 0x580   : > { %1643 = vmatpush3.msra.mxu0 %v927_v44  ;;  %1644 = vmatprep.mubr.msk.f32.mxu0 %vm2088_vm0, %v2087_v0 }
 0x581   : > { %1658 = vmatprep.subr.mxu0 %v2087_v0 }
 0x60c   : > { %v940_v52 = vpop.xlane.xlu1 %939 }
 0x652   : > { %v1013_v49 = vpop.f32.mrb[4].mxu0 }
 0x653   : > { %v1020_v50 = vrot.slane %v1013_v49, %v2470_v11  ;;  %v1641_v51 = vpop.f32.mrb[5].mxu0 }
 0x655   : > { %v1021_v53 = vadd.f32 %v1020_v50, %v940_v52 }
 0x657   : > { %vm1022_vm8 = vcmp.ge.f32.partialorder %v1021_v53, 0.0  ;;  %v1023_v54 = vmul.f32 0.2, %v1021_v53 }
 0x659   : > { %v1024_v55 = vsel %vm1022_vm8, %v1021_v53, %v1023_v54 }
 0x65a   : > { %v1025_v56 = vsel %vm754_vm5, %v1024_v55, -1e+30 }
 0x65b   : > { %v1026_v57 = vsel %vm756_vm6, %v1025_v56, -inf }
 0x65c   : > { %1027 = vmax.xlane.f32.xlu0 %v1026_v57 }
 0x6e9   : > { %v1028_v58 = vpop.xlane.xlu0 %1027 }
 0x6ea   : > { %v1029_v59 = vsub.f32 %v1025_v56, %v1028_v58 }
 0x6ec   : > { %v1030_v60 = vmul.f32 1.442695, %v1029_v59 }
 0x6ee   : > { %1794 = vpow2.f32 %v1030_v60 }
 0x6f8   : > { %v1795_v61 = vpop.eup %1794 }
 0x6f9   : > { %v1032_v62 = vmul.f32 %v1795_v61, %v2474_v16 }
 0x6fb   : > { %v1033_v63 = vsel %vm756_vm6, %v1032_v62, 0.0 }
 0x6fc   : > { %1034 = vadd.xlane.f32.xlu1 %v1033_v63 }
 0x789   : > { %v1035_v4 = vpop.xlane.xlu1 %1034 }
 0x78a   : > { %1796 = vrcp.f32 %v1035_v4  ;;  %vm1036_vm9 = vcmp.gt.f32.partialorder %v1035_v4, 0.0 }
 0x794   : > { %v1797_v5 = vpop.eup %1796 }
 0x795   : > { %v1039_v6 = vsel %vm1036_vm9, %v1797_v5, 0.0 }
 0x796   : > { %v1040_v7 = vmul.f32 %v1039_v6, %v1032_v62 }
 0x798   : > { %1645 = vmatmul.mubr.msk.f32.vlgmr.msra.gmra.mrb[6].mxu0 %vm756_vm6, %v1040_v7 }
 0x799   : > { %1660 = vmatprep.mubr.msk.f32.mxu0 %vm2088_vm0, %v2087_v0 }
 0x86b   : > { %v1116_v13 = vpop.f32.mrb[6].mxu0 }
 0x86c   : > { %v1117_v14 = vadd.f32 %v1575_v12, %v1116_v13  ;;  %v1646_v15 = vpop.f32.mrb[7].mxu0 }
 0x86e   : > { %1656 = vmatmul.mubr.msk.f32.vlgmr.msra.gmra.mrb[4].mxu1 %vm666_vm3, %v1117_v14 }
 0x941   : > { %v1196_v18 = vpop.f32.mrb[4].mxu1 }
 0x942   : > { %v1657_v19 = vpop.f32.mrb[5].mxu1  ;;  %1659 = vmatpush3.xpose.msk.msra.mxu0 %vm666_vm3, %v1196_v18  ;;  %v1206_v21 = vmul.f32 %v1578_v17, %v1196_v18 }
 0x943   : > { %1663 = vmatprep.subr.mxu0 %v2087_v0 }
 0x944   : > { %v1207_v22 = vsel %vm666_vm3, %v1206_v21, 0.0 }
 0x945   : > { %1661 = vmatmul.mubr.msk.f32.vlgmr.msra.gmra.mrb[8].mxu0 %vm666_vm3, %v1124_v20  ;;  %1208 = vadd.xlane.f32.xlu0 %v1207_v22 }
 0x946   : > { %1664 = vmatpush3.msra.mxu0 %v1196_v18  ;;  %1665 = vmatprep.mubr.msk.f32.mxu0 %vm2088_vm0, %v2087_v0 }
 0x9d2   : > { %v1209_v26 = vpop.xlane.xlu0 %1208 }
 0xa18   : > { %v1282_v23 = vpop.f32.mrb[8].mxu0 }
 0xa19   : > { %v1289_v24 = vrot.slane %v1282_v23, %v2470_v11  ;;  %v1662_v25 = vpop.f32.mrb[9].mxu0 }
 0xa1b   : > { %v1290_v27 = vadd.f32 %v1289_v24, %v1209_v26 }
 0xa1d   : > { %vm1291_vm10 = vcmp.ge.f32.partialorder %v1290_v27, 0.0  ;;  %v1292_v28 = vmul.f32 0.2, %v1290_v27 }
 0xa1f   : > { %v1293_v29 = vsel %vm1291_vm10, %v1290_v27, %v1292_v28 }
 0xa20   : > { %v1294_v30 = vsel %vm754_vm5, %v1293_v29, -1e+30 }
 0xa21   : > { %v1295_v31 = vsel %vm756_vm6, %v1294_v30, -inf }
 0xa22   : > { %1296 = vmax.xlane.f32.xlu1 %v1295_v31 }
 0xaaf   : > { %v1297_v32 = vpop.xlane.xlu1 %1296 }
 0xab0   : > { %v1298_v33 = vsub.f32 %v1294_v30, %v1297_v32 }
 0xab2   : > { %v1299_v0 = vmul.f32 1.442695, %v1298_v33 }
 0xab4   : > { %1798 = vpow2.f32 %v1299_v0 }
 0xabe   : > { %v1799_v34 = vpop.eup %1798 }
 0xabf   : > { %v1301_v11 = vmul.f32 %v1799_v34, %v2474_v16 }
 0xac1   : > { %v1302_v35 = vsel %vm756_vm6, %v1301_v11, 0.0 }
 0xac2   : > { %1303 = vadd.xlane.f32.xlu0 %v1302_v35 }
 0xb4f   : > { %v1304_v36 = vpop.xlane.xlu0 %1303 }
 0xb50   : > { %1800 = vrcp.f32 %v1304_v36  ;;  %vm1305_vm11 = vcmp.gt.f32.partialorder %v1304_v36, 0.0 }
 0xb5a   : > { %v1801_v37 = vpop.eup %1800 }
 0xb5b   : > { %v1308_v38 = vsel %vm1305_vm11, %v1801_v37, 0.0 }
 0xb5c   : > { %v1309_v39 = vmul.f32 %v1308_v38, %v1301_v11 }
 0xb5e   : > { %1666 = vmatmul.mubr.msk.f32.vlgmr.msra.gmra.mrb[10].mxu0 %vm756_vm6, %v1309_v39 }
 0xc31   : > { %v1385_v16 = vpop.f32.mrb[10].mxu0 }
 0xc32   : > { %v1386_v41 = vadd.f32 %v1581_v40, %v1385_v16  ;;  %v1667_v42 = vpop.f32.mrb[11].mxu0 }
 0xc34   : > { %1389 = vst.msk [vmem:[%s570_s10] sm:$0xff] %vm666_vm3, %v1386_v41 }
 0xc35   : > { %2013 = shalt.err (!%p2010_p10)
}
 0xc36   : > { %s2014_s4 = scalar_lea.hbm %s2557_s14, 128  ;;  %s2018_s10 = scalar_lea.hbm %s2651_s11, 256 }
 0xc37   : > { %p2015_p4 = scmp.ne.s32.totalorder %s2557_s14, %s2014_s4  ;;  %p2019_p5 = scmp.lt.u32.totalorder %s2557_s14, %s2651_s11 }
 0xc38   : > { %p2020_p7 = scmp.lt.u32.totalorder %s2018_s10, %s2014_s4  ;;  %p2022_p9 = scmp.lt.u32.totalorder %s2014_s4, %s2557_s14 }
 0xc39   : > { %p2016_p11 = pnand %p2015_p4, %p2652_p12 }
 0xc3a   : > { %p2021_p6 = por %p2020_p7, %p2019_p5 }
 0xc3b   : > { %p2017_p8 = pneg %p2016_p11 }
 0xc3c   : > { %p2023_p13 = por %p2022_p9, %p2021_p6 }
 0xc3e   : > { %p2024_p1 = pnand %p2023_p13, %p2017_p8 }
 0xc40   : > { %2027 = shalt.err (!%p2024_p1)
}
 0xc41   : > { %1706 = dma.vmem_to_hbm [thread:$0]  (%p2652_p12), %s2559_s2, 128, %s2557_s14, %s1391_s18  }
 0xc42 PF: > { %s1416_s19 = sand.u32 1, %s2066_s29   ;;  %p2653_p3 = scmp.ne.s32.totalorder %s2638_s12, 0 }
 0xc43   : > { %p2654_p2 = scmp.ge.s32.totalorder %s2078_s16, 2  ;;  %s1417_s27 = scalar_lea.sflag [#allocation4], %s1416_s19 }
 0xc45   : > { %p1732_p0 = pnand %p2654_p2, %p2653_p3 }
 0xc47   : > { %2061 = dma.done.wait (!%p1732_p0), %s1417_s27, 128  }
 0xc48   : > { %2063 = vsyncadd (!%p1732_p0), %s1417_s27, 4294967168  ;;  %p30_p10 = scmp.ge.s32.totalorder %s2347_s25, 4   ;;  %s2655_s29 = smov %s2070_s30 }
 0xc49   : > { %s2656_s30 = smov %s2074_s15  ;;  %s2657_s15 = smov %s2358_s26 }
 0xc4a   : > { %s2658_s16 = smov %s2347_s25  ;;  %32 = sbr.rel (!%p30_p10) target bundleno = 16 (0x10), region = 148 }
 0xc51   :  { %1422 = vsyncpa [#allocation3], 1 }
 0xc52   :  { %1424 = vsyncpa [#allocation3 + $0x1], 1 }
 0xc53   :  { %1425 = vsyncpa [#allocation6], 1 }
 0xc54   :  { %1426 = vsyncpa [#allocation9], 1 }
 0xc55   :  { %1427 = vsyncpa [#allocation12], 1 }
 0xc56   :  { %1428 = vsyncpa [#allocation4], 1 }
 0xc57   :  { %1430 = vsyncpa [#allocation4 + $0x1], 1 }

</bundles_post_ra>
